<compile_context>
chip_gen: v7x
topology: tpu7x:2x2x1
jax: 0.10.0
libtpu: 0.0.40
codegen_flags: <defaults>
</compile_context>

<pallas_src>
import jax
import jax.numpy as jnp
from jax.experimental import pallas as pl
from jax.experimental.pallas import tpu as pltpu


def _mlp_kernel(x_ref,
                w1_ref, b1_ref,
                w2_ref, b2_ref,
                w3_ref, b3_ref,
                w4_ref, b4_ref,
                o_ref):
    # bf16 MXU operands, f32 accumulation, f32 elementwise math.
    x = x_ref[...].astype(jnp.bfloat16)

    h1 = jnp.dot(x, w1_ref[...], preferred_element_type=jnp.float32) + b1_ref[...]
    h1 = jnp.maximum(h1, 0.0)

    h2 = jnp.dot(h1.astype(jnp.bfloat16), w2_ref[...],
                 preferred_element_type=jnp.float32) + b2_ref[...]
    h2 = jnp.maximum(h2, 0.0)

    h3 = jnp.dot(h2.astype(jnp.bfloat16), w3_ref[...],
                 preferred_element_type=jnp.float32) + b3_ref[...]
    h3 = jnp.maximum(h3, 0.0)

    # Final 128->1 layer against h3.T so the result is lane-dense (1, TB):
    # batch lands on lanes and the store is a full, unmasked vst.
    h3_t = h3.T                                              # XLU transpose (f32)
    logits = jnp.dot(w4_ref[...], h3_t.astype(jnp.bfloat16),
                     preferred_element_type=jnp.float32) + b4_ref[...]
    o_ref[...] = jax.nn.sigmoid(logits).astype(o_ref.dtype)


def classifier_forward(x, params, *, tb=256):
    """x: (B, 10) float32 -> (B, 1) float32 sigmoid probabilities."""
    B, F = x.shape
    n_tiles = pl.cdiv(B, tb)
    b_pad = n_tiles * tb
    if b_pad != B:
        x = jnp.pad(x, ((0, b_pad - B), (0, 0)))

    args = (
        x,
        params["w1"], params["b1"],
        params["w2"], params["b2"],
        params["w3"], params["b3"],
        params["w4"], params["b4"],
    )

    def resident(a):
        # Same block index for every grid step -> fetched once, stays in VMEM.
        return pl.BlockSpec(a.shape, lambda i: (0, 0))

    out_row = pl.pallas_call(
        _mlp_kernel,
        out_shape=jax.ShapeDtypeStruct((1, b_pad), jnp.float32),
        grid=(n_tiles,),
        in_specs=[pl.BlockSpec((tb, F), lambda i: (i, 0))]
                 + [resident(a) for a in args[1:]],
        out_specs=pl.BlockSpec((1, tb), lambda i: (0, i)),
        compiler_params=pltpu.CompilerParams(
            dimension_semantics=("parallel",)),  # shard batch tiles across v7x TCs
    )(*args)

    # Lane-dense (1, b_pad) slab -> PyTorch layout (B, 1), dropping padding.
    return out_row[:, :B].T


def init_params(key):
    """nn.Linear-style init. w1..w3 stored transposed as (in, out); the final
    layer is stored as a (1, 128) row + (1, 1) bias. Weights bf16, biases f32."""
    dims = [(10, 32), (32, 64), (64, 128), (128, 1)]
    params = {}
    keys = jax.random.split(key, 2 * len(dims))
    for i, (fan_in, fan_out) in enumerate(dims):
        bound = fan_in ** -0.5
        w = jax.random.uniform(keys[2 * i], (fan_in, fan_out),
                               minval=-bound, maxval=bound, dtype=jnp.float32)
        b = jax.random.uniform(keys[2 * i + 1], (1, fan_out),
                               minval=-bound, maxval=bound, dtype=jnp.float32)
        if i == 3:
            w = w.T  # (1, 128): row layout for the lane-dense final layer
        params[f"w{i + 1}"] = w.astype(jnp.bfloat16)
        params[f"b{i + 1}"] = b  # kept f32 (f32 elementwise path)
    return params


def _ref_forward_bf16(x, params):
    """Pure-JAX reference that emulates the kernel math (bf16 MXU operands)."""
    bf16, f32 = jnp.bfloat16, jnp.float32
    h = jnp.maximum(jnp.dot(x.astype(bf16), params["w1"],
                            preferred_element_type=f32) + params["b1"], 0.0)
    h = jnp.maximum(jnp.dot(h.astype(bf16), params["w2"],
                            preferred_element_type=f32) + params["b2"], 0.0)
    h = jnp.maximum(jnp.dot(h.astype(bf16), params["w3"],
                            preferred_element_type=f32) + params["b3"], 0.0)
    logits = jnp.dot(h.astype(bf16), params["w4"].T,
                     preferred_element_type=f32) + params["b4"]
    return jax.nn.sigmoid(logits)


def _ref_forward_f32(x, params):
    """Original full-f32 forward semantics (for a looser sanity check)."""
    f32 = jnp.float32
    h = jnp.maximum(x @ params["w1"].astype(f32) + params["b1"], 0.0)
    h = jnp.maximum(h @ params["w2"].astype(f32) + params["b2"], 0.0)
    h = jnp.maximum(h @ params["w3"].astype(f32) + params["b3"], 0.0)
    return jax.nn.sigmoid(h @ params["w4"].astype(f32).T + params["b4"])


if __name__ == "__main__":
    key = jax.random.PRNGKey(0)
    pkey, xkey = jax.random.split(key)
    params = init_params(pkey)

    # Non-multiple of the 256-row batch tile: exercises padding + a 2-step grid.
    B = 300
    x = jax.random.normal(xkey, (B, 10), dtype=jnp.float32)

    y = classifier_forward(x, params)
    jax.block_until_ready(y)
    assert y.shape == (B, 1)

    # Tight check vs. a reference using the same bf16-operand math.
    y_ref = _ref_forward_bf16(x, params)
    assert jnp.allclose(y, y_ref, atol=5e-4, rtol=5e-4), \
        float(jnp.max(jnp.abs(y - y_ref)))

    # Loose check vs. the original f32 forward semantics.
    y_f32 = _ref_forward_f32(x, params)
    assert jnp.allclose(y, y_f32, atol=2e-2), \
        float(jnp.max(jnp.abs(y - y_f32)))

    print("KERNEL_OK")
</pallas_src>

<mosaic_0001>
module attributes {stable_mosaic.version = 11 : i64} {
  func.func @_mlp_kernel(%arg0: i32, %arg1: memref<256x10xf32, #tpu.memory_space<vmem>>, %arg2: memref<10x32xbf16, #tpu.memory_space<vmem>>, %arg3: memref<1x32xf32, #tpu.memory_space<vmem>>, %arg4: memref<32x64xbf16, #tpu.memory_space<vmem>>, %arg5: memref<1x64xf32, #tpu.memory_space<vmem>>, %arg6: memref<64x128xbf16, #tpu.memory_space<vmem>>, %arg7: memref<1x128xf32, #tpu.memory_space<vmem>>, %arg8: memref<1x128xbf16, #tpu.memory_space<vmem>>, %arg9: memref<1x1xf32, #tpu.memory_space<vmem>>, %arg10: memref<1x256xf32, #tpu.memory_space<vmem>>) attributes {dimension_semantics = [#tpu.dimension_semantics<parallel>], iteration_bounds = array<i64: 2>, scalar_prefetch = 0 : i64, scratch_operands = 0 : i64, tpu.core_type = #tpu.core_type<tc>, window_params = [{transform_indices = @transform_0, window_bounds = array<i64: 256, 10>}, {pipeline_mode = #tpu.pipeline_mode<synchronous>, transform_indices = @transform_1, window_bounds = array<i64: 10, 32>}, {pipeline_mode = #tpu.pipeline_mode<synchronous>, transform_indices = @transform_2, window_bounds = array<i64: 1, 32>}, {pipeline_mode = #tpu.pipeline_mode<synchronous>, transform_indices = @transform_3, window_bounds = array<i64: 32, 64>}, {pipeline_mode = #tpu.pipeline_mode<synchronous>, transform_indices = @transform_4, window_bounds = array<i64: 1, 64>}, {pipeline_mode = #tpu.pipeline_mode<synchronous>, transform_indices = @transform_5, window_bounds = array<i64: 64, 128>}, {pipeline_mode = #tpu.pipeline_mode<synchronous>, transform_indices = @transform_6, window_bounds = array<i64: 1, 128>}, {pipeline_mode = #tpu.pipeline_mode<synchronous>, transform_indices = @transform_7, window_bounds = array<i64: 1, 128>}, {pipeline_mode = #tpu.pipeline_mode<synchronous>, transform_indices = @transform_8, window_bounds = array<i64: 1, 1>}, {transform_indices = @transform_9, window_bounds = array<i64: 1, 256>}]} {
    %c0 = arith.constant 0 : index
    %c0_0 = arith.constant 0 : index
    %0 = vector.load %arg1[%c0, %c0_0] : memref<256x10xf32, #tpu.memory_space<vmem>>, vector<256x10xf32>
    %1 = arith.truncf %0 : vector<256x10xf32> to vector<256x10xbf16>
    %c0_1 = arith.constant 0 : index
    %c0_2 = arith.constant 0 : index
    %2 = vector.load %arg2[%c0_1, %c0_2] : memref<10x32xbf16, #tpu.memory_space<vmem>>, vector<10x32xbf16>
    %cst = arith.constant dense<0.000000e+00> : vector<256x32xf32>
    %3 = tpu.matmul %1, %2, %cst {dimension_numbers = #tpu.dot_dimension_numbers<[1], [0], [0], [1], [0, 0, 1, 1], [], []>} : vector<256x10xbf16>, vector<10x32xbf16>, vector<256x32xf32> -> vector<256x32xf32>
    %c0_3 = arith.constant 0 : index
    %c0_4 = arith.constant 0 : index
    %4 = vector.load %arg3[%c0_3, %c0_4] : memref<1x32xf32, #tpu.memory_space<vmem>>, vector<1x32xf32>
    %5 = vector.broadcast %4 : vector<1x32xf32> to vector<256x32xf32>
    %6 = arith.addf %3, %5 : vector<256x32xf32>
    %cst_5 = arith.constant 0.000000e+00 : f32
    %7 = vector.broadcast %cst_5 : f32 to vector<256x32xf32>
    %8 = arith.maximumf %6, %7 : vector<256x32xf32>
    %9 = arith.truncf %8 : vector<256x32xf32> to vector<256x32xbf16>
    %c0_6 = arith.constant 0 : index
    %c0_7 = arith.constant 0 : index
    %10 = vector.load %arg4[%c0_6, %c0_7] : memref<32x64xbf16, #tpu.memory_space<vmem>>, vector<32x64xbf16>
    %cst_8 = arith.constant dense<0.000000e+00> : vector<256x64xf32>
    %11 = tpu.matmul %9, %10, %cst_8 {dimension_numbers = #tpu.dot_dimension_numbers<[1], [0], [0], [1], [0, 0, 1, 1], [], []>} : vector<256x32xbf16>, vector<32x64xbf16>, vector<256x64xf32> -> vector<256x64xf32>
    %c0_9 = arith.constant 0 : index
    %c0_10 = arith.constant 0 : index
    %12 = vector.load %arg5[%c0_9, %c0_10] : memref<1x64xf32, #tpu.memory_space<vmem>>, vector<1x64xf32>
    %13 = vector.broadcast %12 : vector<1x64xf32> to vector<256x64xf32>
    %14 = arith.addf %11, %13 : vector<256x64xf32>
    %cst_11 = arith.constant 0.000000e+00 : f32
    %15 = vector.broadcast %cst_11 : f32 to vector<256x64xf32>
    %16 = arith.maximumf %14, %15 : vector<256x64xf32>
    %17 = arith.truncf %16 : vector<256x64xf32> to vector<256x64xbf16>
    %c0_12 = arith.constant 0 : index
    %c0_13 = arith.constant 0 : index
    %18 = vector.load %arg6[%c0_12, %c0_13] : memref<64x128xbf16, #tpu.memory_space<vmem>>, vector<64x128xbf16>
    %cst_14 = arith.constant dense<0.000000e+00> : vector<256x128xf32>
    %19 = tpu.matmul %17, %18, %cst_14 {dimension_numbers = #tpu.dot_dimension_numbers<[1], [0], [0], [1], [0, 0, 1, 1], [], []>} : vector<256x64xbf16>, vector<64x128xbf16>, vector<256x128xf32> -> vector<256x128xf32>
    %c0_15 = arith.constant 0 : index
    %c0_16 = arith.constant 0 : index
    %20 = vector.load %arg7[%c0_15, %c0_16] : memref<1x128xf32, #tpu.memory_space<vmem>>, vector<1x128xf32>
    %21 = vector.broadcast %20 : vector<1x128xf32> to vector<256x128xf32>
    %22 = arith.addf %19, %21 : vector<256x128xf32>
    %cst_17 = arith.constant 0.000000e+00 : f32
    %23 = vector.broadcast %cst_17 : f32 to vector<256x128xf32>
    %24 = arith.maximumf %22, %23 : vector<256x128xf32>
    %25 = tpu.transpose %24, [1, 0] : vector<256x128xf32> -> vector<128x256xf32>
    %c0_18 = arith.constant 0 : index
    %c0_19 = arith.constant 0 : index
    %26 = vector.load %arg8[%c0_18, %c0_19] : memref<1x128xbf16, #tpu.memory_space<vmem>>, vector<1x128xbf16>
    %27 = arith.truncf %25 : vector<128x256xf32> to vector<128x256xbf16>
    %cst_20 = arith.constant dense<0.000000e+00> : vector<1x256xf32>
    %28 = tpu.matmul %26, %27, %cst_20 {dimension_numbers = #tpu.dot_dimension_numbers<[1], [0], [0], [1], [0, 0, 1, 1], [], []>} : vector<1x128xbf16>, vector<128x256xbf16>, vector<1x256xf32> -> vector<1x256xf32>
    %c0_21 = arith.constant 0 : index
    %c0_22 = arith.constant 0 : index
    %29 = vector.load %arg9[%c0_21, %c0_22] : memref<1x1xf32, #tpu.memory_space<vmem>>, vector<1x1xf32>
    %30 = vector.broadcast %29 : vector<1x1xf32> to vector<1x256xf32>
    %31 = arith.addf %28, %30 : vector<1x256xf32>
    %32 = arith.negf %31 : vector<1x256xf32>
    %33 = math.exp %32 : vector<1x256xf32>
    %cst_23 = arith.constant 1.000000e+00 : f32
    %34 = vector.broadcast %cst_23 : f32 to vector<1x256xf32>
    %35 = arith.addf %34, %33 : vector<1x256xf32>
    %36 = arith.divf %34, %35 : vector<1x256xf32>
    %c0_24 = arith.constant 0 : index
    %c0_25 = arith.constant 0 : index
    %37 = vector.load %arg10[%c0_24, %c0_25] : memref<1x256xf32, #tpu.memory_space<vmem>>, vector<1x256xf32>
    tpu.vector_store %arg10[%c0_24, %c0_25], %36 {strides = array<i32>} : memref<1x256xf32, #tpu.memory_space<vmem>>, vector<1x256xf32>,
    return
  }
  func.func @transform_0(%arg0: i32) -> (i32, i32) {
    %c0_i32 = arith.constant 0 : i32
    %c0_i32_0 = arith.constant 0 : i32
    return %arg0, %c0_i32 : i32, i32
  }
  func.func @transform_1(%arg0: i32) -> (i32, i32) {
    %c0_i32 = arith.constant 0 : i32
    %c0_i32_0 = arith.constant 0 : i32
    %c0_i32_1 = arith.constant 0 : i32
    return %c0_i32, %c0_i32_0 : i32, i32
  }
  func.func @transform_2(%arg0: i32) -> (i32, i32) {
    %c0_i32 = arith.constant 0 : i32
    %c0_i32_0 = arith.constant 0 : i32
    %c0_i32_1 = arith.constant 0 : i32
    return %c0_i32, %c0_i32_0 : i32, i32
  }
  func.func @transform_3(%arg0: i32) -> (i32, i32) {
    %c0_i32 = arith.constant 0 : i32
    %c0_i32_0 = arith.constant 0 : i32
    %c0_i32_1 = arith.constant 0 : i32
    return %c0_i32, %c0_i32_0 : i32, i32
  }
  func.func @transform_4(%arg0: i32) -> (i32, i32) {
    %c0_i32 = arith.constant 0 : i32
    %c0_i32_0 = arith.constant 0 : i32
    %c0_i32_1 = arith.constant 0 : i32
    return %c0_i32, %c0_i32_0 : i32, i32
  }
  func.func @transform_5(%arg0: i32) -> (i32, i32) {
    %c0_i32 = arith.constant 0 : i32
    %c0_i32_0 = arith.constant 0 : i32
    %c0_i32_1 = arith.constant 0 : i32
    return %c0_i32, %c0_i32_0 : i32, i32
  }
  func.func @transform_6(%arg0: i32) -> (i32, i32) {
    %c0_i32 = arith.constant 0 : i32
    %c0_i32_0 = arith.constant 0 : i32
    %c0_i32_1 = arith.constant 0 : i32
    return %c0_i32, %c0_i32_0 : i32, i32
  }
  func.func @transform_7(%arg0: i32) -> (i32, i32) {
    %c0_i32 = arith.constant 0 : i32
    %c0_i32_0 = arith.constant 0 : i32
    %c0_i32_1 = arith.constant 0 : i32
    return %c0_i32, %c0_i32_0 : i32, i32
  }
  func.func @transform_8(%arg0: i32) -> (i32, i32) {
    %c0_i32 = arith.constant 0 : i32
    %c0_i32_0 = arith.constant 0 : i32
    %c0_i32_1 = arith.constant 0 : i32
    return %c0_i32, %c0_i32_0 : i32, i32
  }
  func.func @transform_9(%arg0: i32) -> (i32, i32) {
    %c0_i32 = arith.constant 0 : i32
    %c0_i32_0 = arith.constant 0 : i32
    return %c0_i32, %arg0 : i32, i32
  }
}

</mosaic_0001>

<bundles_post_ra>
// kernel: tpu_custom_call.1
= control target key start
LH: loop header
LB: loop body
LE: loop exit
PB: predicated region body
PF: predicated region fallthrough
CT: control target
= control target key end

     0   :  { %s2333_s0 = inlined_call_operand.vmem [shape: f32[512,10], index: 0, kind: input, shape index: {}]   ;;  %s2334_s1 = inlined_call_operand.vmem [shape: bf16[10,32], index: 1, kind: input, shape index: {}]   ;;  %s2335_s2 = inlined_call_operand.vmem [shape: f32[1,32], index: 2, kind: input, shape index: {}]   ;;  %s2336_s3 = inlined_call_operand.vmem [shape: bf16[32,64], index: 3, kind: input, shape index: {}]   ;;  %s2337_s4 = inlined_call_operand.vmem [shape: f32[1,64], index: 4, kind: input, shape index: {}]   ;;  %s2338_s5 = inlined_call_operand.vmem [shape: bf16[64,128], index: 5, kind: input, shape index: {}]   ;;  %s2339_s6 = inlined_call_operand.vmem [shape: f32[1,128], index: 6, kind: input, shape index: {}]   ;;  %s2340_s7 = inlined_call_operand.vmem [shape: bf16[1,128], index: 7, kind: input, shape index: {}]   ;;  %s2341_s8 = inlined_call_operand.<no memory space> [shape: f32[1,1], index: 8, kind: input, shape index: {}]   ;;  %s2342_s9 = inlined_call_operand.hbm [shape: f32[1,512], index: 9, kind: output, shape index: {}]  }
   0x1   :  { %v14_v0 = vstv %s2341_s8 }
   0x2   :  { %15 = vst [vmem:[#allocation2] sm:$0x1] %v14_v0 }
   0x3   :  { %16 = vsyncpa [#allocation4], 0 }
   0x4   :  { %18 = vsyncpa [#allocation4 + $0x1], 0  ;;  %s1996_s11 = smov 0   ;;  %s1998_s12 = smov 0  }
   0x5   :  { %s2000_s13 = smov 0   ;;  %s2002_s14 = smov 0  }
   0x6 LB: > { %s1463_s8 = sadd.s32 4294967295, %s1938_s14   ;;  %s1464_s15 = sadd.s32 4294967294, %s1938_s14   ;;  %s1938_s14 = sphi %s2002_s14, %s2348_s14   ;;  %s1934_s13 = sphi %s2000_s13, %s2347_s13   ;;  %s1930_s12 = sphi %s1998_s12, %s2346_s12   ;;  %s1926_s11 = sphi %s1996_s11, %s2345_s11  }
   0x7   : > { %s2019_s16 = sadd.s32 1, %s1938_s14   ;;  %s225_s17 = sadd.s32 1, %s1934_s13 }
   0x8   : > { %s222_s18 = ssub.s32 %s1938_s14, %s2019_s16  ;;  %p235_p0 = scmp.ne.s32.totalorder %s1934_s13, %s1930_s12 }
   0x9   : > { %p223_p1 = scmp.eq.s32.totalorder %s222_s18, 0  ;;  %p236_p2 = scmp.eq.s32.totalorder %s1463_s8, 1 }
   0xa   : > { %p241_p3 = scmp.ne.s32.totalorder %s1930_s12, %s1926_s11  ;;  %p242_p4 = scmp.eq.s32.totalorder %s1464_s15, 1 }
   0xb   : > { %s2029_s19 = scalar_select %p223_p1, %s1934_s13, %s225_s17  }
   0xc   : > { %p2031_p5 = por %p236_p2, %p235_p0  ;;  %p2035_p6 = por %p242_p4, %p241_p3 }
   0xd   : > { %p1467_p7 = scmp.ge.s32.totalorder %s1938_s14, 1  ;;  %p293_p8 = scmp.lt.s32.totalorder %s1938_s14, 3 }
   0xf   : > { %p294_p9 = pnand %p1467_p7, %p293_p8 }
  0x10   : > { %v1861_v1 = vld [vmem:[%s2334_s1] sm:$0x1f] (!%p294_p9)   ;;  %vm448_vm0 = vcmask (!%p294_p9), 1044480   ;;  %s2044_s24 = sshll.u32 (!%p294_p9), %s1463_s8, 5  ;;  %vm399_vm1 = vcmask (!%p294_p9), 80896   ;;  %v1863_v52 = vld [vmem:[%s2336_s3 + $0x8] sm:$0xff] (!%p294_p9)  }
  0x11   : > { %297 = sbr.rel (%p294_p9) target bundleno = 1185 (0x4a1), region = 56  ;;  %v1862_v2 = vld [vmem:[%s2336_s3] sm:$0xff] (!%p294_p9)   ;;  %1704 = vmatprep.subr.msk.bf16.mxu0 (!%p294_p9), %vm448_vm0, %v1861_v1  ;;  %v450_v3 = vsel (!%p294_p9), %vm448_vm0, %v1861_v1, 0  ;;  %p330_p10 = scmp.lt.s32.totalorder (!%p294_p9), %s2044_s24, 63  ;;  %1705 = vmatprep.subr.msk.bf16.mxu1 (!%p294_p9), %vm448_vm0, %v1861_v1  ;;  %v1865_v54 = vld [vmem:[%s2338_s5 + $0x8] sm:$0xff] (!%p294_p9)   ;;  %v1866_v55 = vld [vmem:[%s2338_s5 + $0x10] sm:$0xff] (!%p294_p9)  }
  0x12   : > { %1593 = vmatpush3.bf16.msra.mxu0 (!%p294_p9), %v450_v3  ;;  %1703 = vmatpush3.bf16.msra.mxu1 (!%p294_p9), %v450_v3  ;;  %v1864_v53 = vld [vmem:[%s2338_s5] sm:$0xff] (!%p294_p9)   ;;  %vm684_vm2 = vcmask (!%p294_p9), 261120   ;;  %vm981_vm3 = vcmask (!%p294_p9), 523264   ;;  %s326_s23 = sand.u32 (!%p294_p9), 1, %s1930_s12   ;;  %s2291_s30 = scalar_lea.hbm (!%p294_p9), %s2342_s9, %s2044_s24 }
  0x13   : > { %1626 = vmatprep.subr.bf16.mxu1 (!%p294_p9), %v1862_v2  ;;  %1662 = vmatprep.subr.bf16.mxu0 (!%p294_p9), %v1864_v53  ;;  %v2119_v56 = vld [vmem:[%s2335_s2] ss:$0 sm:$0xff] (!%p294_p9)  ;;  %s1468_s25 = sshll.u32 (!%p294_p9), %s326_s23, 1  ;;  %s1942_s15 = smov (!%p294_p9), [#allocation3]  }
  0x14   : > { %s328_s26 = scalar_lea.vmem (!%p294_p9), [#allocation3], %s1468_s25  ;;  %s1880_s17 = sshll.u32 (!%p294_p9), %s1942_s15, 4  ;;  %s1881_s17 = int_to_ptr.vmem [resolvable:$false] %s1880_s17 }
  0x15   : > { %s1882_s18 = scalar_lea.vmem (!%p294_p9), %s1881_s17, 64 }
  0x18   : > { %s331_s27 = scalar_select %p330_p10, %s2044_s24, 63 }
  0x1a   : > { %s1470_s28 = sshll.u32 %s331_s27, 3  ;;  %s1405_s27 = sshll.u32 %s328_s26, 4  ;;  %s2293_s27 = int_to_ptr.vmem [resolvable:$true] %s1405_s27 }
  0x1b   : > { %s2054_s10 = scalar_lea.vmem %s2333_s0, %s1470_s28  ;;  %s1876_s8 = scalar_lea.vmem %s2293_s27, 32 }
  0x1c   : > { %v337_v4 = vld [vmem:[%s2054_s10] sm:$0xff]  ;;  %v338_v5 = vld [vmem:[%s2054_s10 + $0x8] sm:$0xff]  ;;  %v339_v6 = vld [vmem:[%s2054_s10 + $0x10] sm:$0xff]  ;;  %p1877_p11 = scmp.ne.s32.totalorder %s2293_s27, %s1876_s8  ;;  %p1883_p0 = scmp.lt.s32.totalorder %s2293_s27, %s1881_s17 }
  0x1d   : > { %v369_v7 = vpack.c.bf16 %v338_v5, %v337_v4  ;;  %v340_v8 = vld [vmem:[%s2054_s10 + $0x18] sm:$0xff]  ;;  %v341_v9 = vld [vmem:[%s2054_s10 + $0x20] sm:$0xff]  ;;  %v342_v10 = vld [vmem:[%s2054_s10 + $0x28] sm:$0xff]  ;;  %p1884_p1 = scmp.lt.s32.totalorder %s1882_s18, %s1876_s8 }
  0x1e   : > { %v370_v11 = vpack.c.bf16 %v340_v8, %v339_v6  ;;  %v371_v12 = vpack.c.bf16 %v342_v10, %v341_v9  ;;  %v343_v13 = vld [vmem:[%s2054_s10 + $0x30] sm:$0xff]  ;;  %v344_v14 = vld [vmem:[%s2054_s10 + $0x38] sm:$0xff]  ;;  %v345_v15 = vld [vmem:[%s2054_s10 + $0x40] sm:$0xff]  ;;  %p1878_p12 = pnand %p1877_p11, %p2031_p5 }
  0x1f   : > { %1594 = vmatprep.mubr.msk.bf16.mxu0 %vm399_vm1, %v369_v7  ;;  %v346_v16 = vld [vmem:[%s2054_s10 + $0x48] sm:$0xff]  ;;  %v357_v17 = vld [vmem:[%s2054_s10 + $0xa0] sm:$0xff]  ;;  %v359_v19 = vld [vmem:[%s2054_s10 + $0xb0] sm:$0xff]  ;;  %v372_v21 = vpack.c.bf16 %v344_v14, %v343_v13  ;;  %p1885_p2 = por %p1884_p1, %p1883_p0 }
  0x20   : > { %1595 = vmatmul.mubr.msk.bf16.vlgmr.msra.gmra.mrb[0].mxu0 %vm399_vm1, %v370_v11  ;;  %v358_v18 = vld [vmem:[%s2054_s10 + $0xa8] sm:$0xff]  ;;  %v360_v20 = vld [vmem:[%s2054_s10 + $0xb8] sm:$0xff]  ;;  %v361_v24 = vld [vmem:[%s2054_s10 + $0xc0] sm:$0xff]  ;;  %v373_v26 = vpack.c.bf16 %v346_v16, %v345_v15  ;;  %p1879_p13 = pneg %p1878_p12 }
  0x21   : > { %1598 = vmatprep.mubr.msk.bf16.mxu0 %vm399_vm1, %v371_v12  ;;  %v379_v22 = vpack.c.bf16 %v358_v18, %v357_v17  ;;  %v380_v23 = vpack.c.bf16 %v360_v20, %v359_v19  ;;  %v362_v25 = vld [vmem:[%s2054_s10 + $0xc8] sm:$0xff]  ;;  %v347_v28 = vld [vmem:[%s2054_s10 + $0x50] sm:$0xff]  ;;  %v364_v30 = vld [vmem:[%s2054_s10 + $0xd8] sm:$0xff]  ;;  %1663 = vmatpush3.bf16.msra.mxu0 %v1864_v53 }
  0x22   : > { %v381_v27 = vpack.c.bf16 %v362_v25, %v361_v24  ;;  %v363_v29 = vld [vmem:[%s2054_s10 + $0xd0] sm:$0xff]  ;;  %v348_v31 = vld [vmem:[%s2054_s10 + $0x58] sm:$0xff]  ;;  %v365_v32 = vld [vmem:[%s2054_s10 + $0xe0] sm:$0xff]  ;;  %1664 = vmatprep.subr.bf16.mxu0 %v1865_v54  ;;  %p1886_p3 = pnand %p1885_p2, %p1879_p13 }
  0x23   : > { %1614 = vmatprep.mubr.msk.bf16.mxu1 %vm399_vm1, %v379_v22  ;;  %v366_v33 = vld [vmem:[%s2054_s10 + $0xe8] sm:$0xff]  ;;  %v349_v34 = vld [vmem:[%s2054_s10 + $0x60] sm:$0xff]  ;;  %v382_v36 = vpack.c.bf16 %v364_v30, %v363_v29  ;;  %v374_v37 = vpack.c.bf16 %v348_v31, %v347_v28  ;;  %v367_v40 = vld [vmem:[%s2054_s10 + $0xf0] sm:$0xff] }
  0x24   : > { %1615 = vmatmul.mubr.msk.bf16.vlgmr.msra.gmra.mrb[0].mxu1 %vm399_vm1, %v380_v23  ;;  %v350_v35 = vld [vmem:[%s2054_s10 + $0x68] sm:$0xff]  ;;  %v383_v38 = vpack.c.bf16 %v366_v33, %v365_v32  ;;  %v368_v41 = vld [vmem:[%s2054_s10 + $0xf8] sm:$0xff]  ;;  %v351_v42 = vld [vmem:[%s2054_s10 + $0x70] sm:$0xff] }
  0x25   : > { %1618 = vmatprep.mubr.msk.bf16.mxu1 %vm399_vm1, %v381_v27  ;;  %1627 = vmatpush3.bf16.msra.mxu1 %v1862_v2  ;;  %v375_v39 = vpack.c.bf16 %v350_v35, %v349_v34  ;;  %v352_v43 = vld [vmem:[%s2054_s10 + $0x78] sm:$0xff]  ;;  %v353_v44 = vld [vmem:[%s2054_s10 + $0x80] sm:$0xff]  ;;  %v354_v45 = vld [vmem:[%s2054_s10 + $0x88] sm:$0xff]  ;;  %v384_v46 = vpack.c.bf16 %v368_v41, %v367_v40 }
  0x26   : > { %v376_v47 = vpack.c.bf16 %v352_v43, %v351_v42  ;;  %v377_v48 = vpack.c.bf16 %v354_v45, %v353_v44  ;;  %v355_v49 = vld [vmem:[%s2054_s10 + $0x90] sm:$0xff]  ;;  %v356_v50 = vld [vmem:[%s2054_s10 + $0x98] sm:$0xff]  ;;  %1628 = vmatprep.subr.bf16.mxu1 %v1863_v52  ;;  %1665 = vmatpush3.bf16.msra.mxu0 %v1865_v54  ;;  %s1391_s10 = scalar_lea.sflag [#allocation4], %s326_s23 }
  0x27   : > { %v378_v51 = vpack.c.bf16 %v356_v50, %v355_v49  ;;  %1666 = vmatprep.subr.bf16.mxu0 %v1866_v55 }
  0x28   : > { %1599 = vmatmul.mubr.msk.bf16.gmra.mrb[4].mxu0 %vm399_vm1, %v372_v21 }
  0x29   : > { %1602 = vmatprep.mubr.msk.bf16.mxu0 %vm399_vm1, %v373_v26  ;;  %1629 = vmatpush3.bf16.msra.mxu1 %v1863_v52 }
  0x2a   : > { %1667 = vmatpush3.bf16.msra.mxu0 %v1866_v55 }
  0x2c   : > { %1619 = vmatmul.mubr.msk.bf16.gmra.mrb[4].mxu1 %vm399_vm1, %v382_v36 }
  0x2d   : > { %1622 = vmatprep.mubr.msk.bf16.mxu1 %vm399_vm1, %v383_v38 }
  0x30   : > { %1603 = vmatmul.mubr.msk.bf16.gmra.mrb[8].mxu0 %vm399_vm1, %v374_v37 }
  0x31   : > { %1606 = vmatprep.mubr.msk.bf16.mxu0 %vm399_vm1, %v375_v39 }
  0x34   : > { %1623 = vmatmul.mubr.msk.bf16.gmra.mrb[8].mxu1 %vm399_vm1, %v384_v46 }
  0x38   : > { %1607 = vmatmul.mubr.msk.bf16.gmra.mrb[12].mxu0 %vm399_vm1, %v376_v47 }
  0x39   : > { %1610 = vmatprep.mubr.msk.bf16.mxu0 %vm399_vm1, %v377_v48 }
  0x40   : > { %1611 = vmatmul.mubr.msk.bf16.gmra.mrb[16].mxu0 %vm399_vm1, %v378_v51 }
  0xf3   : > { %v1596_v57 = vpop.f32.mrb[0].mxu0 }
  0xf4   : > { %v495_v58 = vadd.f32 %v1596_v57, %v2119_v56  ;;  %v486_v59 = vpop.f32.mrb[1].mxu0 }
  0xf5   : > { %v487_v60 = vadd.f32 %v2119_v56, %v486_v59  ;;  %v1597_v61 = vpop.f32.mrb[2].mxu0 }
  0xf6   : > { %v498_v62 = vadd.f32 %v1597_v61, %v2119_v56  ;;  %v489_v63 = vpop.f32.mrb[3].mxu0  ;;  %v615_v1 = vmax.f32 %v495_v58, 0.0 }
  0xf7   : > { %v490_v0 = vadd.f32 %v2119_v56, %v489_v63  ;;  %v613_v3 = vmax.f32 %v487_v60, 0.0  ;;  %v1616_v6 = vpop.f32.mrb[0].mxu1 }
  0xf8   : > { %v616_v2 = vmax.f32 %v498_v62, 0.0  ;;  %v575_v9 = vadd.f32 %v1616_v6, %v2119_v56  ;;  %v566_v10 = vpop.f32.mrb[1].mxu1 }
  0xf9   : > { %v614_v4 = vmax.f32 %v490_v0, 0.0  ;;  %v567_v13 = vadd.f32 %v2119_v56, %v566_v10  ;;  %v1617_v14 = vpop.f32.mrb[2].mxu1 }
  0xfa   : > { %v646_v5 = vpack.c.bf16 %v616_v2, %v615_v1  ;;  %v635_v17 = vmax.f32 %v575_v9, 0.0  ;;  %v578_v18 = vadd.f32 %v1617_v14, %v2119_v56  ;;  %v569_v19 = vpop.f32.mrb[3].mxu1 }
  0xfb   : > { %v645_v7 = vpack.c.bf16 %v614_v4, %v613_v3  ;;  %v1600_v8 = vpop.f32.mrb[4].mxu0  ;;  %v633_v22 = vmax.f32 %v567_v13, 0.0  ;;  %v570_v23 = vadd.f32 %v2119_v56, %v569_v19 }
  0xfc   : > { %v511_v11 = vadd.f32 %v1600_v8, %v2119_v56  ;;  %v502_v12 = vpop.f32.mrb[5].mxu0  ;;  %v636_v25 = vmax.f32 %v578_v18, 0.0 }
  0xfd   : > { %v503_v15 = vadd.f32 %v2119_v56, %v502_v12  ;;  %v1601_v16 = vpop.f32.mrb[6].mxu0  ;;  %1630 = vmatprep.mubr.msk.bf16.mxu1 %vm684_vm2, %v645_v7  ;;  %v634_v28 = vmax.f32 %v570_v23, 0.0 }
  0xfe   : > { %v514_v20 = vadd.f32 %v1601_v16, %v2119_v56  ;;  %v505_v21 = vpop.f32.mrb[7].mxu0  ;;  %1631 = vmatmul.mubr.msk.bf16.vlgmr.msra.gmra.mrb[12].mxu1 %vm684_vm2, %v646_v5  ;;  %v619_v26 = vmax.f32 %v511_v11, 0.0  ;;  %v2135_v31 = vpack.c.bf16 %v636_v25, %v635_v17 }
  0xff   : > { %v506_v24 = vadd.f32 %v2119_v56, %v505_v21  ;;  %v617_v29 = vmax.f32 %v503_v15, 0.0  ;;  %v2137_v33 = vpack.c.bf16 %v634_v28, %v633_v22  ;;  %v1620_v34 = vpop.f32.mrb[4].mxu1 }
 0x100   : > { %v620_v27 = vmax.f32 %v514_v20, 0.0  ;;  %v591_v37 = vadd.f32 %v1620_v34, %v2119_v56  ;;  %v582_v38 = vpop.f32.mrb[5].mxu1 }
 0x101   : > { %v618_v30 = vmax.f32 %v506_v24, 0.0  ;;  %v583_v41 = vadd.f32 %v2119_v56, %v582_v38  ;;  %v1621_v42 = vpop.f32.mrb[6].mxu1 }
 0x102   : > { %v648_v32 = vpack.c.bf16 %v620_v27, %v619_v26  ;;  %v639_v45 = vmax.f32 %v591_v37, 0.0  ;;  %v594_v46 = vadd.f32 %v1621_v42, %v2119_v56  ;;  %v585_v47 = vpop.f32.mrb[7].mxu1 }
 0x103   : > { %v647_v35 = vpack.c.bf16 %v618_v30, %v617_v29  ;;  %v1604_v36 = vpop.f32.mrb[8].mxu0  ;;  %v637_v50 = vmax.f32 %v583_v41, 0.0  ;;  %v586_v51 = vadd.f32 %v2119_v56, %v585_v47 }
 0x104   : > { %v527_v39 = vadd.f32 %v1604_v36, %v2119_v56  ;;  %v518_v40 = vpop.f32.mrb[9].mxu0  ;;  %v640_v53 = vmax.f32 %v594_v46, 0.0 }
 0x105   : > { %v519_v43 = vadd.f32 %v2119_v56, %v518_v40  ;;  %v1605_v44 = vpop.f32.mrb[10].mxu0  ;;  %1634 = vmatprep.mubr.msk.bf16.mxu1 %vm684_vm2, %v647_v35  ;;  %v638_v57 = vmax.f32 %v586_v51, 0.0 }
 0x106   : > { %v530_v48 = vadd.f32 %v1605_v44, %v2119_v56  ;;  %v521_v49 = vpop.f32.mrb[11].mxu0  ;;  %1635 = vmatmul.mubr.msk.bf16.gmra.mrb[16].mxu1 %vm684_vm2, %v648_v32  ;;  %v623_v54 = vmax.f32 %v527_v39, 0.0  ;;  %v658_v60 = vpack.c.bf16 %v640_v53, %v639_v45 }
 0x107   : > { %v522_v52 = vadd.f32 %v2119_v56, %v521_v49  ;;  %v621_v58 = vmax.f32 %v519_v43, 0.0  ;;  %v657_v62 = vpack.c.bf16 %v638_v57, %v637_v50  ;;  %v1624_v63 = vpop.f32.mrb[8].mxu1 }
 0x108   : > { %v624_v55 = vmax.f32 %v530_v48, 0.0  ;;  %v607_v2 = vadd.f32 %v1624_v63, %v2119_v56  ;;  %v598_v3 = vpop.f32.mrb[9].mxu1 }
 0x109   : > { %v622_v59 = vmax.f32 %v522_v52, 0.0  ;;  %v599_v6 = vadd.f32 %v2119_v56, %v598_v3  ;;  %v1625_v7 = vpop.f32.mrb[10].mxu1 }
 0x10a   : > { %v650_v61 = vpack.c.bf16 %v624_v55, %v623_v54  ;;  %v643_v10 = vmax.f32 %v607_v2, 0.0  ;;  %v610_v11 = vadd.f32 %v1625_v7, %v2119_v56  ;;  %v601_v12 = vpop.f32.mrb[11].mxu1 }
 0x10b   : > { %v649_v0 = vpack.c.bf16 %v622_v59, %v621_v58  ;;  %v1608_v1 = vpop.f32.mrb[12].mxu0  ;;  %v641_v15 = vmax.f32 %v599_v6, 0.0  ;;  %v602_v16 = vadd.f32 %v2119_v56, %v601_v12 }
 0x10c   : > { %v543_v4 = vadd.f32 %v1608_v1, %v2119_v56  ;;  %v534_v5 = vpop.f32.mrb[13].mxu0  ;;  %v644_v18 = vmax.f32 %v610_v11, 0.0 }
 0x10d   : > { %v535_v8 = vadd.f32 %v2119_v56, %v534_v5  ;;  %v1609_v9 = vpop.f32.mrb[14].mxu0  ;;  %1638 = vmatprep.mubr.msk.bf16.mxu1 %vm684_vm2, %v649_v0  ;;  %v642_v21 = vmax.f32 %v602_v16, 0.0 }
 0x10e   : > { %v546_v13 = vadd.f32 %v1609_v9, %v2119_v56  ;;  %v537_v14 = vpop.f32.mrb[15].mxu0  ;;  %1639 = vmatmul.mubr.msk.bf16.gmra.mrb[20].mxu1 %vm684_vm2, %v650_v61  ;;  %v627_v19 = vmax.f32 %v543_v4, 0.0  ;;  %v660_v24 = vpack.c.bf16 %v644_v18, %v643_v10 }
 0x10f   : > { %v538_v17 = vadd.f32 %v2119_v56, %v537_v14  ;;  %v625_v22 = vmax.f32 %v535_v8, 0.0  ;;  %v659_v26 = vpack.c.bf16 %v642_v21, %v641_v15 }
 0x110   : > { %v628_v20 = vmax.f32 %v546_v13, 0.0 }
 0x111   : > { %v626_v23 = vmax.f32 %v538_v17, 0.0 }
 0x112   : > { %v652_v25 = vpack.c.bf16 %v628_v20, %v627_v19 }
 0x113   : > { %v651_v27 = vpack.c.bf16 %v626_v23, %v625_v22  ;;  %v1612_v28 = vpop.f32.mrb[16].mxu0 }
 0x114   : > { %v559_v29 = vadd.f32 %v1612_v28, %v2119_v56  ;;  %v550_v30 = vpop.f32.mrb[17].mxu0 }
 0x115   : > { %v551_v32 = vadd.f32 %v2119_v56, %v550_v30  ;;  %v1613_v34 = vpop.f32.mrb[18].mxu0  ;;  %1642 = vmatprep.mubr.msk.bf16.mxu1 %vm684_vm2, %v651_v27 }
 0x116   : > { %v562_v35 = vadd.f32 %v1613_v34, %v2119_v56  ;;  %v553_v36 = vpop.f32.mrb[19].mxu0  ;;  %1643 = vmatmul.mubr.msk.bf16.gmra.mrb[24].mxu1 %vm684_vm2, %v652_v25  ;;  %v631_v38 = vmax.f32 %v559_v29, 0.0 }
 0x117   : > { %v554_v37 = vadd.f32 %v2119_v56, %v553_v36  ;;  %v629_v40 = vmax.f32 %v551_v32, 0.0  ;;  %v1867_v56 = vld [vmem:[%s2338_s5 + $0x18] sm:$0xff]  }
 0x118   : > { %v632_v39 = vmax.f32 %v562_v35, 0.0  ;;  %1668 = vmatprep.subr.bf16.mxu0 %v1867_v56 }
 0x119   : > { %v630_v41 = vmax.f32 %v554_v37, 0.0  ;;  %1669 = vmatpush3.bf16.msra.mxu0 %v1867_v56 }
 0x11a   : > { %v654_v42 = vpack.c.bf16 %v632_v39, %v631_v38 }
 0x11b   : > { %v653_v43 = vpack.c.bf16 %v630_v41, %v629_v40 }
 0x11d   : > { %1646 = vmatprep.mubr.msk.bf16.mxu1 %vm684_vm2, %v653_v43 }
 0x11e   : > { %1647 = vmatmul.mubr.msk.bf16.gmra.mrb[28].mxu1 %vm684_vm2, %v654_v42 }
 0x11f   : > { %1650 = vmatprep.mubr.msk.bf16.mxu1 %vm684_vm2, %v2137_v33  ;;  %v2181_v33 = vld [vmem:[%s2337_s4] ss:$0 sm:$0xff] }
 0x126   : > { %1651 = vmatmul.mubr.msk.bf16.gmra.mrb[32].mxu1 %vm684_vm2, %v2135_v31 }
 0x127   : > { %1654 = vmatprep.mubr.msk.bf16.mxu1 %vm684_vm2, %v657_v62 }
 0x12e   : > { %1655 = vmatmul.mubr.msk.bf16.gmra.mrb[36].mxu1 %vm684_vm2, %v658_v60 }
 0x12f   : > { %1658 = vmatprep.mubr.msk.bf16.mxu1 %vm684_vm2, %v659_v26 }
 0x136   : > { %1659 = vmatmul.mubr.msk.bf16.gmra.mrb[40].mxu1 %vm684_vm2, %v660_v24 }
 0x1d1   : > { %v1632_v31 = vpop.f32.mrb[12].mxu1 }
 0x1d2   : > { %v776_v44 = vadd.f32 %v1632_v31, %v2181_v33  ;;  %v767_v45 = vpop.f32.mrb[13].mxu1 }
 0x1d3   : > { %v768_v46 = vadd.f32 %v2181_v33, %v767_v45  ;;  %v1633_v47 = vpop.f32.mrb[14].mxu1 }
 0x1d4   : > { %v779_v48 = vadd.f32 %v1633_v47, %v2181_v33  ;;  %v770_v49 = vpop.f32.mrb[15].mxu1  ;;  %v896_v51 = vmax.f32 %v776_v44, 0.0 }
 0x1d5   : > { %v771_v50 = vadd.f32 %v2181_v33, %v770_v49  ;;  %v894_v53 = vmax.f32 %v768_v46, 0.0 }
 0x1d6   : > { %v897_v52 = vmax.f32 %v779_v48, 0.0 }
 0x1d7   : > { %v895_v54 = vmax.f32 %v771_v50, 0.0 }
 0x1d8   : > { %v927_v55 = vpack.c.bf16 %v897_v52, %v896_v51 }
 0x1d9   : > { %v926_v57 = vpack.c.bf16 %v895_v54, %v894_v53  ;;  %v1636_v58 = vpop.f32.mrb[16].mxu1 }
 0x1da   : > { %v792_v59 = vadd.f32 %v1636_v58, %v2181_v33  ;;  %v783_v60 = vpop.f32.mrb[17].mxu1 }
 0x1db   : > { %v784_v61 = vadd.f32 %v2181_v33, %v783_v60  ;;  %v1637_v62 = vpop.f32.mrb[18].mxu1  ;;  %1670 = vmatprep.mubr.msk.bf16.mxu0 %vm981_vm3, %v926_v57 }
 0x1dc   : > { %v795_v63 = vadd.f32 %v1637_v62, %v2181_v33  ;;  %v786_v0 = vpop.f32.mrb[19].mxu1  ;;  %1671 = vmatmul.mubr.msk.bf16.vlgmr.msra.gmra.mrb[20].mxu0 %vm981_vm3, %v927_v55  ;;  %v900_v2 = vmax.f32 %v792_v59, 0.0 }
 0x1dd   : > { %v787_v1 = vadd.f32 %v2181_v33, %v786_v0  ;;  %v898_v4 = vmax.f32 %v784_v61, 0.0 }
 0x1de   : > { %v901_v3 = vmax.f32 %v795_v63, 0.0 }
 0x1df   : > { %v899_v5 = vmax.f32 %v787_v1, 0.0 }
 0x1e0   : > { %v929_v6 = vpack.c.bf16 %v901_v3, %v900_v2 }
 0x1e1   : > { %v928_v7 = vpack.c.bf16 %v899_v5, %v898_v4  ;;  %v1640_v8 = vpop.f32.mrb[20].mxu1 }
 0x1e2   : > { %v808_v9 = vadd.f32 %v1640_v8, %v2181_v33  ;;  %v799_v10 = vpop.f32.mrb[21].mxu1 }
 0x1e3   : > { %v800_v11 = vadd.f32 %v2181_v33, %v799_v10  ;;  %v1641_v12 = vpop.f32.mrb[22].mxu1  ;;  %1674 = vmatprep.mubr.msk.bf16.mxu0 %vm981_vm3, %v928_v7 }
 0x1e4   : > { %v811_v13 = vadd.f32 %v1641_v12, %v2181_v33  ;;  %v802_v14 = vpop.f32.mrb[23].mxu1  ;;  %1675 = vmatmul.mubr.msk.bf16.gmra.mrb[24].mxu0 %vm981_vm3, %v929_v6  ;;  %v904_v16 = vmax.f32 %v808_v9, 0.0 }
 0x1e5   : > { %v803_v15 = vadd.f32 %v2181_v33, %v802_v14  ;;  %v902_v18 = vmax.f32 %v800_v11, 0.0 }
 0x1e6   : > { %v905_v17 = vmax.f32 %v811_v13, 0.0 }
 0x1e7   : > { %v903_v19 = vmax.f32 %v803_v15, 0.0 }
 0x1e8   : > { %v931_v20 = vpack.c.bf16 %v905_v17, %v904_v16 }
 0x1e9   : > { %v930_v21 = vpack.c.bf16 %v903_v19, %v902_v18  ;;  %v1644_v22 = vpop.f32.mrb[24].mxu1 }
 0x1ea   : > { %v824_v23 = vadd.f32 %v1644_v22, %v2181_v33  ;;  %v815_v24 = vpop.f32.mrb[25].mxu1 }
 0x1eb   : > { %v816_v25 = vadd.f32 %v2181_v33, %v815_v24  ;;  %v1645_v26 = vpop.f32.mrb[26].mxu1  ;;  %1678 = vmatprep.mubr.msk.bf16.mxu0 %vm981_vm3, %v930_v21 }
 0x1ec   : > { %v827_v27 = vadd.f32 %v1645_v26, %v2181_v33  ;;  %v818_v28 = vpop.f32.mrb[27].mxu1  ;;  %1679 = vmatmul.mubr.msk.bf16.gmra.mrb[28].mxu0 %vm981_vm3, %v931_v20  ;;  %v908_v30 = vmax.f32 %v824_v23, 0.0 }
 0x1ed   : > { %v819_v29 = vadd.f32 %v2181_v33, %v818_v28  ;;  %v906_v34 = vmax.f32 %v816_v25, 0.0 }
 0x1ee   : > { %v909_v32 = vmax.f32 %v827_v27, 0.0 }
 0x1ef   : > { %v907_v35 = vmax.f32 %v819_v29, 0.0 }
 0x1f0   : > { %v933_v36 = vpack.c.bf16 %v909_v32, %v908_v30 }
 0x1f1   : > { %v932_v37 = vpack.c.bf16 %v907_v35, %v906_v34  ;;  %v1648_v38 = vpop.f32.mrb[28].mxu1 }
 0x1f2   : > { %v840_v39 = vadd.f32 %v1648_v38, %v2181_v33  ;;  %v831_v40 = vpop.f32.mrb[29].mxu1 }
 0x1f3   : > { %v832_v41 = vadd.f32 %v2181_v33, %v831_v40  ;;  %v1649_v42 = vpop.f32.mrb[30].mxu1  ;;  %1682 = vmatprep.mubr.msk.bf16.mxu0 %vm981_vm3, %v932_v37 }
 0x1f4   : > { %v843_v43 = vadd.f32 %v1649_v42, %v2181_v33  ;;  %v834_v56 = vpop.f32.mrb[31].mxu1  ;;  %1683 = vmatmul.mubr.msk.bf16.gmra.mrb[32].mxu0 %vm981_vm3, %v933_v36  ;;  %v912_v44 = vmax.f32 %v840_v39, 0.0 }
 0x1f5   : > { %v835_v31 = vadd.f32 %v2181_v33, %v834_v56  ;;  %v910_v46 = vmax.f32 %v832_v41, 0.0 }
 0x1f6   : > { %v913_v45 = vmax.f32 %v843_v43, 0.0 }
 0x1f7   : > { %v911_v47 = vmax.f32 %v835_v31, 0.0 }
 0x1f8   : > { %v935_v48 = vpack.c.bf16 %v913_v45, %v912_v44  ;;  %v2244_v44 = vld [vmem:[%s2339_s6] ss:$0 sm:$0xff] }
 0x1f9   : > { %v934_v49 = vpack.c.bf16 %v911_v47, %v910_v46  ;;  %v1652_v50 = vpop.f32.mrb[32].mxu1 }
 0x1fa   : > { %v856_v51 = vadd.f32 %v1652_v50, %v2181_v33  ;;  %v847_v52 = vpop.f32.mrb[33].mxu1 }
 0x1fb   : > { %v848_v53 = vadd.f32 %v2181_v33, %v847_v52  ;;  %v1653_v54 = vpop.f32.mrb[34].mxu1  ;;  %1686 = vmatprep.mubr.msk.bf16.mxu0 %vm981_vm3, %v934_v49 }
 0x1fc   : > { %v916_v55 = vmax.f32 %v856_v51, 0.0  ;;  %v859_v57 = vadd.f32 %v1653_v54, %v2181_v33  ;;  %v850_v58 = vpop.f32.mrb[35].mxu1  ;;  %1687 = vmatmul.mubr.msk.bf16.gmra.mrb[36].mxu0 %vm981_vm3, %v935_v48 }
 0x1fd   : > { %v914_v59 = vmax.f32 %v848_v53, 0.0  ;;  %v851_v60 = vadd.f32 %v2181_v33, %v850_v58 }
 0x1fe   : > { %v917_v61 = vmax.f32 %v859_v57, 0.0 }
 0x1ff   : > { %v915_v62 = vmax.f32 %v851_v60, 0.0 }
 0x200   : > { %v937_v63 = vpack.c.bf16 %v917_v61, %v916_v55 }
 0x201   : > { %v936_v0 = vpack.c.bf16 %v915_v62, %v914_v59  ;;  %v1656_v1 = vpop.f32.mrb[36].mxu1 }
 0x202   : > { %v872_v2 = vadd.f32 %v1656_v1, %v2181_v33  ;;  %v863_v3 = vpop.f32.mrb[37].mxu1 }
 0x203   : > { %v864_v4 = vadd.f32 %v2181_v33, %v863_v3  ;;  %v1657_v5 = vpop.f32.mrb[38].mxu1  ;;  %1690 = vmatprep.mubr.msk.bf16.mxu0 %vm981_vm3, %v936_v0 }
 0x204   : > { %v920_v6 = vmax.f32 %v872_v2, 0.0  ;;  %v875_v7 = vadd.f32 %v1657_v5, %v2181_v33  ;;  %v866_v8 = vpop.f32.mrb[39].mxu1  ;;  %1691 = vmatmul.mubr.msk.bf16.gmra.mrb[40].mxu0 %vm981_vm3, %v937_v63 }
 0x205   : > { %v918_v9 = vmax.f32 %v864_v4, 0.0  ;;  %v867_v10 = vadd.f32 %v2181_v33, %v866_v8 }
 0x206   : > { %v921_v11 = vmax.f32 %v875_v7, 0.0 }
 0x207   : > { %v919_v12 = vmax.f32 %v867_v10, 0.0 }
 0x208   : > { %v939_v13 = vpack.c.bf16 %v921_v11, %v920_v6 }
 0x209   : > { %v938_v14 = vpack.c.bf16 %v919_v12, %v918_v9  ;;  %v1660_v15 = vpop.f32.mrb[40].mxu1 }
 0x20a   : > { %v888_v16 = vadd.f32 %v1660_v15, %v2181_v33  ;;  %v879_v17 = vpop.f32.mrb[41].mxu1 }
 0x20b   : > { %v880_v18 = vadd.f32 %v2181_v33, %v879_v17  ;;  %v1661_v19 = vpop.f32.mrb[42].mxu1  ;;  %1694 = vmatprep.mubr.msk.bf16.mxu0 %vm981_vm3, %v938_v14 }
 0x20c   : > { %v924_v20 = vmax.f32 %v888_v16, 0.0  ;;  %v891_v21 = vadd.f32 %v1661_v19, %v2181_v33  ;;  %v882_v22 = vpop.f32.mrb[43].mxu1  ;;  %1695 = vmatmul.mubr.msk.bf16.gmra.mrb[44].mxu0 %vm981_vm3, %v939_v13 }
 0x20d   : > { %v922_v23 = vmax.f32 %v880_v18, 0.0  ;;  %v883_v24 = vadd.f32 %v2181_v33, %v882_v22 }
 0x20e   : > { %v925_v25 = vmax.f32 %v891_v21, 0.0 }
 0x20f   : > { %v923_v26 = vmax.f32 %v883_v24, 0.0 }
 0x210   : > { %v941_v27 = vpack.c.bf16 %v925_v25, %v924_v20 }
 0x211   : > { %v940_v28 = vpack.c.bf16 %v923_v26, %v922_v23 }
 0x213   : > { %1698 = vmatprep.mubr.msk.bf16.mxu0 %vm981_vm3, %v940_v28 }
 0x214   : > { %1699 = vmatmul.mubr.msk.bf16.gmra.mrb[48].mxu0 %vm981_vm3, %v941_v27 }
 0x2af   : > { %v1672_v29 = vpop.f32.mrb[20].mxu0 }
 0x2b0   : > { %v1064_v30 = vpop.f32.mrb[21].mxu0  ;;  %v1073_v45 = vadd.f32 %v1672_v29, %v2244_v44 }
 0x2b1   : > { %v1673_v32 = vpop.f32.mrb[22].mxu0  ;;  %v1065_v46 = vadd.f32 %v2244_v44, %v1064_v30 }
 0x2b2   : > { %v1067_v34 = vpop.f32.mrb[23].mxu0  ;;  %v1076_v48 = vadd.f32 %v1673_v32, %v2244_v44  ;;  %v1193_v54 = vmax.f32 %v1073_v45, 0.0 }
 0x2b3   : > { %v1068_v51 = vadd.f32 %v2244_v44, %v1067_v34  ;;  %v1191_v59 = vmax.f32 %v1065_v46, 0.0 }
 0x2b4   : > { %v1194_v62 = vmax.f32 %v1076_v48, 0.0 }
 0x2b5   : > { %v1192_v1 = vmax.f32 %v1068_v51, 0.0 }
 0x2b7   : > { %v1676_v35 = vpop.f32.mrb[24].mxu0 }
 0x2b8   : > { %v1080_v36 = vpop.f32.mrb[25].mxu0  ;;  %v1089_v4 = vadd.f32 %v1676_v35, %v2244_v44 }
 0x2b9   : > { %v1677_v37 = vpop.f32.mrb[26].mxu0  ;;  %v1081_v6 = vadd.f32 %v2244_v44, %v1080_v36 }
 0x2ba   : > { %v1083_v38 = vpop.f32.mrb[27].mxu0  ;;  %v1092_v9 = vadd.f32 %v1677_v37, %v2244_v44  ;;  %v1197_v15 = vmax.f32 %v1089_v4, 0.0 }
 0x2bb   : > { %v1084_v12 = vadd.f32 %v2244_v44, %v1083_v38  ;;  %v1195_v19 = vmax.f32 %v1081_v6, 0.0 }
 0x2bc   : > { %v1198_v22 = vmax.f32 %v1092_v9, 0.0 }
 0x2bd   : > { %v1196_v25 = vmax.f32 %v1084_v12, 0.0 }
 0x2bf   : > { %v1680_v39 = vpop.f32.mrb[28].mxu0 }
 0x2c0   : > { %v1096_v40 = vpop.f32.mrb[29].mxu0  ;;  %v1105_v28 = vadd.f32 %v1680_v39, %v2244_v44 }
 0x2c1   : > { %v1681_v41 = vpop.f32.mrb[30].mxu0  ;;  %v1097_v30 = vadd.f32 %v2244_v44, %v1096_v40 }
 0x2c2   : > { %v2231_v33 = vpop.f32.mrb[31].mxu0  ;;  %v1108_v35 = vadd.f32 %v1681_v41, %v2244_v44 }
 0x2c3   : > { %v1100_v38 = vadd.f32 %v2244_v44, %v2231_v33  ;;  %v1199_v40 = vmax.f32 %v1097_v30, 0.0 }
 0x2c4   : > { %v1202_v41 = vmax.f32 %v1108_v35, 0.0 }
 0x2c7   : > { %v2233_v42 = vpop.f32.mrb[32].mxu0 }
 0x2c8   : > { %v2235_v43 = vpop.f32.mrb[33].mxu0  ;;  %v1121_v33 = vadd.f32 %v2233_v42, %v2244_v44 }
 0x2c9   : > { %v2237_v56 = vpop.f32.mrb[34].mxu0 }
 0x2ca   : > { %v2239_v31 = vpop.f32.mrb[35].mxu0  ;;  %v1205_v42 = vmax.f32 %v1121_v33, 0.0 }
 0x2cf   : > { %v1688_v47 = vpop.f32.mrb[36].mxu0 }
 0x2d0   : > { %v1137_v49 = vadd.f32 %v1688_v47, %v2244_v44  ;;  %v1128_v50 = vpop.f32.mrb[37].mxu0  ;;  %v1201_v47 = vmax.f32 %v1105_v28, 0.0 }
 0x2d1   : > { %v1129_v52 = vadd.f32 %v2244_v44, %v1128_v50  ;;  %v1689_v53 = vpop.f32.mrb[38].mxu0 }
 0x2d2   : > { %v1209_v55 = vmax.f32 %v1137_v49, 0.0  ;;  %v1140_v57 = vadd.f32 %v1689_v53, %v2244_v44  ;;  %v1131_v58 = vpop.f32.mrb[39].mxu0 }
 0x2d3   : > { %v1207_v60 = vmax.f32 %v1129_v52, 0.0  ;;  %v1132_v61 = vadd.f32 %v2244_v44, %v1131_v58 }
 0x2d4   : > { %v1210_v63 = vmax.f32 %v1140_v57, 0.0  ;;  %v1751_v0 = vpack.i.bf16 %v1193_v54, %v1209_v55  ;;  %v1200_v54 = vmax.f32 %v1100_v38, 0.0 }
 0x2d5   : > { %v1208_v2 = vmax.f32 %v1132_v61, 0.0  ;;  %v1747_v3 = vpack.i.bf16 %v1191_v59, %v1207_v60  ;;  %v1113_v59 = vadd.f32 %v2244_v44, %v2235_v43 }
 0x2d6   : > { %v1753_v5 = vpack.i.bf16 %v1194_v62, %v1210_v63  ;;  %v1124_v62 = vadd.f32 %v2237_v56, %v2244_v44 }
 0x2d7   : > { %v1692_v7 = vpop.f32.mrb[40].mxu0  ;;  %1748 = vxpose.xlu0.b32.start [1/16] %v1747_v3, 128  ;;  %v1749_v8 = vpack.i.bf16 %v1192_v1, %v1208_v2  ;;  %v1116_v1 = vadd.f32 %v2244_v44, %v2239_v31  ;;  %v1203_v6 = vmax.f32 %v1113_v59, 0.0 }
 0x2d8   : > { %v1153_v10 = vadd.f32 %v1692_v7, %v2244_v44  ;;  %v1144_v11 = vpop.f32.mrb[41].mxu0  ;;  %v1206_v56 = vmax.f32 %v1124_v62, 0.0 }
 0x2d9   : > { %v1145_v13 = vadd.f32 %v2244_v44, %v1144_v11  ;;  %v1693_v14 = vpop.f32.mrb[42].mxu0  ;;  %v1204_v11 = vmax.f32 %v1116_v1, 0.0 }
 0x2da   : > { %v1213_v16 = vmax.f32 %v1153_v10, 0.0  ;;  %v1156_v17 = vadd.f32 %v1693_v14, %v2244_v44  ;;  %v1147_v18 = vpop.f32.mrb[43].mxu0 }
 0x2db   : > { %v1211_v20 = vmax.f32 %v1145_v13, 0.0  ;;  %v1148_v21 = vadd.f32 %v2244_v44, %v1147_v18  ;;  %1750 = vxpose.xlu0.b32.cont [2/16] %v1749_v8, 128 }
 0x2dc   : > { %v1214_v23 = vmax.f32 %v1156_v17, 0.0  ;;  %v1759_v24 = vpack.i.bf16 %v1197_v15, %v1213_v16  ;;  %v1304_v15 = vld [vmem:[#allocation2] sm:$0x1] }
 0x2dd   : > { %v1212_v26 = vmax.f32 %v1148_v21, 0.0  ;;  %v1755_v27 = vpack.i.bf16 %v1195_v19, %v1211_v20 }
 0x2de   : > { %v1761_v29 = vpack.i.bf16 %v1198_v22, %v1214_v23 }
 0x2df   : > { %v1696_v32 = vpop.f32.mrb[44].mxu0  ;;  %1752 = vxpose.xlu0.b32.cont [3/16] %v1751_v0, 128  ;;  %v1757_v34 = vpack.i.bf16 %v1196_v25, %v1212_v26 }
 0x2e0   : > { %v1169_v36 = vadd.f32 %v1696_v32, %v2244_v44  ;;  %v1160_v37 = vpop.f32.mrb[45].mxu0 }
 0x2e1   : > { %v1161_v45 = vadd.f32 %v2244_v44, %v1160_v37  ;;  %v1697_v46 = vpop.f32.mrb[46].mxu0 }
 0x2e2   : > { %v1217_v48 = vmax.f32 %v1169_v36, 0.0  ;;  %v1172_v39 = vadd.f32 %v1697_v46, %v2244_v44  ;;  %v1163_v49 = vpop.f32.mrb[47].mxu0 }
 0x2e3   : > { %v1215_v50 = vmax.f32 %v1161_v45, 0.0  ;;  %v1164_v51 = vadd.f32 %v2244_v44, %v1163_v49  ;;  %1754 = vxpose.xlu0.b32.cont [4/16] %v1753_v5, 128 }
 0x2e4   : > { %v1218_v52 = vmax.f32 %v1172_v39, 0.0  ;;  %v1767_v53 = vpack.i.bf16 %v1201_v47, %v1217_v48 }
 0x2e5   : > { %v1216_v55 = vmax.f32 %v1164_v51, 0.0  ;;  %v1763_v57 = vpack.i.bf16 %v1199_v40, %v1215_v50 }
 0x2e6   : > { %v1769_v58 = vpack.i.bf16 %v1202_v41, %v1218_v52 }
 0x2e7   : > { %v1700_v60 = vpop.f32.mrb[48].mxu0  ;;  %1756 = vxpose.xlu0.b32.cont [5/16] %v1755_v27, 128  ;;  %v1765_v61 = vpack.i.bf16 %v1200_v54, %v1216_v55 }
 0x2e8   : > { %v1185_v63 = vadd.f32 %v1700_v60, %v2244_v44  ;;  %v1176_v0 = vpop.f32.mrb[49].mxu0 }
 0x2e9   : > { %v1177_v2 = vadd.f32 %v2244_v44, %v1176_v0  ;;  %v1701_v3 = vpop.f32.mrb[50].mxu0 }
 0x2ea   : > { %v1221_v4 = vmax.f32 %v1185_v63, 0.0  ;;  %v1188_v5 = vadd.f32 %v1701_v3, %v2244_v44  ;;  %v1179_v43 = vpop.f32.mrb[51].mxu0 }
 0x2eb   : > { %v1219_v7 = vmax.f32 %v1177_v2, 0.0  ;;  %v1180_v8 = vadd.f32 %v2244_v44, %v1179_v43  ;;  %1758 = vxpose.xlu0.b32.cont [6/16] %v1757_v34, 128  ;;  %v1940_v44 = vmov 0  }
 0x2ec   : > { %v1222_v9 = vmax.f32 %v1188_v5, 0.0  ;;  %v1775_v10 = vpack.i.bf16 %v1205_v42, %v1221_v4  ;;  %1346 = vmatprep.mubr.bf16.mxu1 %v1940_v44  ;;  %1859 = vset.pattern.permute.xlu1 %v1940_v44 }
 0x2ed   : > { %v1220_v12 = vmax.f32 %v1180_v8, 0.0  ;;  %v1771_v13 = vpack.i.bf16 %v1203_v6, %v1219_v7  ;;  %1307 = vperm.xlu1 %1859, %v1304_v15  }
 0x2ee   : > { %v1777_v31 = vpack.i.bf16 %v1206_v56, %v1222_v9 }
 0x2ef   : > { %1760 = vxpose.xlu0.b32.cont [7/16] %v1759_v24, 128  ;;  %v1773_v14 = vpack.i.bf16 %v1204_v11, %v1220_v12 }
 0x2f3   : > { %1762 = vxpose.xlu0.b32.cont [8/16] %v1761_v29, 128 }
 0x2f7   : > { %1764 = vxpose.xlu0.b32.cont [9/16] %v1763_v57, 128 }
 0x2fb   : > { %1766 = vxpose.xlu0.b32.cont [10/16] %v1765_v61, 128 }
 0x2ff   : > { %1768 = vxpose.xlu0.b32.cont [11/16] %v1767_v53, 128 }
 0x303   : > { %1770 = vxpose.xlu0.b32.cont [12/16] %v1769_v58, 128 }
 0x307   : > { %1772 = vxpose.xlu0.b32.cont [13/16] %v1771_v13, 128 }
 0x30b   : > { %1774 = vxpose.xlu0.b32.cont [14/16] %v1773_v14, 128 }
 0x30f   : > { %1776 = vxpose.xlu0.b32.cont [15/16] %v1775_v10, 128 }
 0x313   : > { %1778 = vxpose.xlu0.b32.end [16/16] %v1777_v31, 128 }
 0x33c   : > { %1860 = vset.pattern.permute.xlu0 %v1940_v44 }
 0x357   : > { %v1779_v16 = vpop.trf.xlu0 }
 0x358   : > { %v1783_v17 = vunpack.i.h.bf16 %v1779_v16  ;;  %v1780_v18 = vunpack.i.l.bf16 %v1779_v16  ;;  %v1287_v16 = vld [vmem:[%s2340_s7] sm:$0x1] }
 0x35b   : > { %v1784_v19 = vpop.trf.xlu0 }
 0x35c   : > { %v1788_v20 = vunpack.i.h.bf16 %v1784_v19  ;;  %v1785_v21 = vunpack.i.l.bf16 %v1784_v19 }
 0x35e   : > { %v1289_v22 = vpack.c.bf16 %v1785_v21, %v1780_v18  ;;  %v1288_v23 = vpack.c.bf16 %v1788_v20, %v1783_v17  ;;  %v1310_v17 = vlaneseq }
 0x35f   : > { %v1789_v24 = vpop.trf.xlu0 }
 0x360   : > { %1314 = vmatprep.subr.bf16.mxu1 %v1289_v22  ;;  %v1793_v25 = vunpack.i.h.bf16 %v1789_v24  ;;  %v1790_v26 = vunpack.i.l.bf16 %v1789_v24  ;;  %v1311_v18 = vshrl.u32 %v1310_v17, 7  ;;  %vm1387_vm4 = vcmp.lt.s32.totalorder %v1310_v17, 256 }
 0x361   : > { %1315 = vmatpush1.bf16.msra.mxu1 %v1288_v23 }
 0x362   : > { %v1312_v19 = vsub.s32 0, %v1311_v18 }
 0x363   : > { %v1794_v27 = vpop.trf.xlu0 }
 0x364   : > { %v1798_v28 = vunpack.i.h.bf16 %v1794_v27  ;;  %v1795_v29 = vunpack.i.l.bf16 %v1794_v27 }
 0x366   : > { %v1291_v30 = vpack.c.bf16 %v1795_v29, %v1790_v26  ;;  %v1290_v32 = vpack.c.bf16 %v1798_v28, %v1793_v25 }
 0x367   : > { %v1799_v34 = vpop.trf.xlu0 }
 0x368   : > { %1316 = vmatprep.subr.bf16.mxu1 %v1291_v30  ;;  %v1803_v35 = vunpack.i.h.bf16 %v1799_v34  ;;  %v1800_v36 = vunpack.i.l.bf16 %v1799_v34 }
 0x369   : > { %1317 = vmatpush1.bf16.msra.mxu1 %v1290_v32 }
 0x36b   : > { %v1804_v37 = vpop.trf.xlu0 }
 0x36c   : > { %v1808_v38 = vunpack.i.h.bf16 %v1804_v37  ;;  %v1805_v45 = vunpack.i.l.bf16 %v1804_v37  ;;  %v1308_v20 = vpop.permute.xlu1 %1307 }
 0x36d   : > { %v1313_v21 = vrot.slane %v1308_v20, %v1312_v19 }
 0x36e   : > { %v1293_v46 = vpack.c.bf16 %v1805_v45, %v1800_v36  ;;  %v1292_v47 = vpack.c.bf16 %v1808_v38, %v1803_v35  ;;  %v1941_v36 = vmov 1966171168  }
 0x36f   : > { %v1809_v48 = vpop.trf.xlu0  ;;  %v1371_v37 = vunpack.c.l.s4 %v1941_v36 }
 0x370   : > { %1318 = vmatprep.subr.bf16.mxu1 %v1293_v46  ;;  %v1813_v39 = vunpack.i.h.bf16 %v1809_v48  ;;  %v1810_v49 = vunpack.i.l.bf16 %v1809_v48 }
 0x371   : > { %1319 = vmatpush1.bf16.msra.mxu1 %v1292_v47  ;;  %v1372_v38 = vunpack.c.0.s8 %v1371_v37 }
 0x373   : > { %v1814_v40 = vpop.trf.xlu0  ;;  %v1375_v46 = vsub.s32 %v1372_v38, %v1311_v18 }
 0x374   : > { %v1818_v50 = vunpack.i.h.bf16 %v1814_v40  ;;  %v1815_v51 = vunpack.i.l.bf16 %v1814_v40 }
 0x376   : > { %v1295_v41 = vpack.c.bf16 %v1815_v51, %v1810_v49  ;;  %v1294_v52 = vpack.c.bf16 %v1818_v50, %v1813_v39 }
 0x377   : > { %v1819_v53 = vpop.trf.xlu0 }
 0x378   : > { %1320 = vmatprep.subr.bf16.mxu1 %v1295_v41  ;;  %v1823_v54 = vunpack.i.h.bf16 %v1819_v53  ;;  %v1820_v55 = vunpack.i.l.bf16 %v1819_v53 }
 0x379   : > { %1321 = vmatpush1.bf16.msra.mxu1 %v1294_v52 }
 0x37b   : > { %v1824_v57 = vpop.trf.xlu0 }
 0x37c   : > { %v1828_v33 = vunpack.i.h.bf16 %v1824_v57  ;;  %v1825_v58 = vunpack.i.l.bf16 %v1824_v57 }
 0x37e   : > { %v1297_v59 = vpack.c.bf16 %v1825_v58, %v1820_v55  ;;  %v1296_v60 = vpack.c.bf16 %v1828_v33, %v1823_v54 }
 0x37f   : > { %v1829_v61 = vpop.trf.xlu0 }
 0x380   : > { %1322 = vmatprep.subr.bf16.mxu1 %v1297_v59  ;;  %v1833_v62 = vunpack.i.h.bf16 %v1829_v61  ;;  %v1830_v63 = vunpack.i.l.bf16 %v1829_v61 }
 0x381   : > { %1323 = vmatpush1.bf16.msra.mxu1 %v1296_v60 }
 0x383   : > { %v1834_v0 = vpop.trf.xlu0 }
 0x384   : > { %v1838_v1 = vunpack.i.h.bf16 %v1834_v0  ;;  %v1835_v2 = vunpack.i.l.bf16 %v1834_v0 }
 0x386   : > { %v1299_v3 = vpack.c.bf16 %v1835_v2, %v1830_v63  ;;  %v1298_v42 = vpack.c.bf16 %v1838_v1, %v1833_v62 }
 0x387   : > { %v1839_v4 = vpop.trf.xlu0 }
 0x388   : > { %1324 = vmatprep.subr.bf16.mxu1 %v1299_v3  ;;  %v1843_v5 = vunpack.i.h.bf16 %v1839_v4  ;;  %v1840_v43 = vunpack.i.l.bf16 %v1839_v4 }
 0x389   : > { %1325 = vmatpush1.bf16.msra.mxu1 %v1298_v42 }
 0x38b   : > { %v1844_v6 = vpop.trf.xlu0 }
 0x38c   : > { %v1848_v7 = vunpack.i.h.bf16 %v1844_v6  ;;  %v1845_v8 = vunpack.i.l.bf16 %v1844_v6 }
 0x38e   : > { %v1301_v56 = vpack.c.bf16 %v1845_v8, %v1840_v43  ;;  %v1300_v9 = vpack.c.bf16 %v1848_v7, %v1843_v5 }
 0x38f   : > { %v1849_v10 = vpop.trf.xlu0 }
 0x390   : > { %1326 = vmatprep.subr.bf16.mxu1 %v1301_v56  ;;  %v1853_v11 = vunpack.i.h.bf16 %v1849_v10  ;;  %v1850_v12 = vunpack.i.l.bf16 %v1849_v10 }
 0x391   : > { %1327 = vmatpush1.bf16.msra.mxu1 %v1300_v9 }
 0x393   : > { %v1854_v13 = vpop.trf.xlu0 }
 0x394   : > { %v1858_v31 = vunpack.i.h.bf16 %v1854_v13  ;;  %v1855_v14 = vunpack.i.l.bf16 %v1854_v13 }
 0x396   : > { %v1302_v44 = vpack.c.bf16 %v1858_v31, %v1853_v11  ;;  %v1303_v15 = vpack.c.bf16 %v1855_v14, %v1850_v12 }
 0x398   : > { %1328 = vmatprep.subr.bf16.mxu1 %v1303_v15 }
 0x399   : > { %1329 = vmatpush1.bf16.msra.mxu1 %v1302_v44 }
 0x39c   : > { %1347 = vmatmul.mubr.bf16.vlgmr.msra.gmra.mrb[44].mxu1 %v1287_v16 }
 0x46f   : > { %v1348_v22 = vpop.f32.mrb[44].mxu1 }
 0x470   : > { %v1349_v23 = vadd.f32 %v1348_v22, %v1313_v21  ;;  %v1350_v24 = vpop.f32.mrb[45].mxu1 }
 0x471   : > { %v1351_v25 = vadd.f32 %v1350_v24, %v1313_v21  ;;  %v1352_v26 = vpop.f32.mrb[46].mxu1 }
 0x472   : > { %v1529_v27 = vmul.f32 -1.442695, %v1349_v23  ;;  %v1353_v28 = vpop.f32.mrb[47].mxu1 }
 0x473   : > { %v1530_v29 = vmul.f32 -1.442695, %v1351_v25 }
 0x474   : > { %1868 = vpow2.f32 %v1529_v27 }
 0x475   : > { %1870 = vpow2.f32 %v1530_v29 }
 0x47e   : > { %v1869_v30 = vpop.eup %1868 }
 0x47f   : > { %v1871_v32 = vpop.eup %1870  ;;  %v1361_v34 = vadd.f32 1.0, %v1869_v30 }
 0x480   : > { %v1362_v35 = vadd.f32 1.0, %v1871_v32 }
 0x481   : > { %1872 = vrcp.f32 %v1361_v34 }
 0x482   : > { %1874 = vrcp.f32 %v1362_v35 }
 0x48b   : > { %v1873_v45 = vpop.eup %1872 }
 0x48c   : > { %v1875_v47 = vpop.eup %1874 }
 0x48d   : > { %v1369_v48 = vcombine.low %v1873_v45, %v1875_v47 }
 0x48f   : > { %v1376_v39 = vrot.slane %v1369_v48, %v1375_v46 }
 0x491   : > { %v1383_v49 = vrot.slane %v1376_v39, %v1375_v46 }
 0x493   : > { %1389 = vst.msk [vmem:[%s328_s26] sm:$0x3] %vm1387_vm4, %v1383_v49 }
 0x494   : > { %1889 = shalt.err (!%p1886_p3)
}
 0x495   : > { %s1890_s24 = scalar_lea.hbm %s2291_s30, 32  ;;  %s1894_s25 = scalar_lea.hbm %s2342_s9, 64 }
 0x496   : > { %p1891_p4 = scmp.ne.s32.totalorder %s2291_s30, %s1890_s24  ;;  %p1895_p9 = scmp.lt.u32.totalorder %s2291_s30, %s2342_s9 }
 0x497   : > { %p1896_p10 = scmp.lt.u32.totalorder %s1894_s25, %s1890_s24  ;;  %p1898_p12 = scmp.lt.u32.totalorder %s1890_s24, %s2291_s30 }
 0x498   : > { %p1892_p7 = pnand %p1891_p4, %p2031_p5 }
 0x499   : > { %p1897_p11 = por %p1896_p10, %p1895_p9 }
 0x49a   : > { %p1893_p8 = pneg %p1892_p7 }
 0x49b   : > { %p1899_p13 = por %p1898_p12, %p1897_p11 }
 0x49d   : > { %p1900_p0 = pnand %p1899_p13, %p1893_p8 }
 0x49f   : > { %1903 = shalt.err (!%p1900_p0)
}
 0x4a0   : > { %1706 = dma.vmem_to_hbm [thread:$0]  (%p2031_p5), %s2293_s27, 32, %s2291_s30, %s1391_s10  }
 0x4a1 PF: > { %p1712_p1 = scmp.ge.s32.totalorder %s1938_s14, 2  ;;  %s1417_s29 = sand.u32 1, %s1926_s11  }
 0x4a2   : > { %s1418_s8 = scalar_lea.sflag [#allocation4], %s1417_s29 }
 0x4a3   : > { %p1709_p2 = pnand %p1712_p1, %p2035_p6 }
 0x4a5   : > { %1921 = dma.done.wait (!%p1709_p2), %s1418_s8, 32  }
 0x4a6   : > { %1923 = vsyncadd (!%p1709_p2), %s1418_s8, 4294967264  ;;  %p21_p3 = scmp.ge.s32.totalorder %s2019_s16, 4   ;;  %s2345_s11 = smov %s1930_s12 }
 0x4a7   : > { %s2346_s12 = smov %s1934_s13  ;;  %s2347_s13 = smov %s2029_s19 }
 0x4a8   : > { %s2348_s14 = smov %s2019_s16  ;;  %23 = sbr.rel (!%p21_p3) target bundleno = 6 (0x6), region = 91 }
 0x4af   :  { %1423 = vsyncpa [#allocation4], 1 }
 0x4b0   :  { %1425 = vsyncpa [#allocation4 + $0x1], 1 }

</bundles_post_ra>
